<compile_context>
chip_gen: v5e
topology: v5e:2x2
jax: 0.10.0
libtpu: 0.0.40
codegen_flags: <defaults>
</compile_context>

<pallas_src>
import functools

import jax
import jax.numpy as jnp
from jax import lax
from jax.experimental import pallas as pl
from jax.experimental.pallas import tpu as pltpu

EPS = 1e-5
LANE = 128     # vreg lane width
SUBLANE = 8    # f32 sublane count


def _round_up(x, m):
    return (x + m - 1) // m * m


def _pad2(a, rows, cols):
    r, c = a.shape
    return jnp.pad(a, ((0, rows - r), (0, cols - c)))


def _batch_pad(b):
    # 8 sublanes min (f32).  Once B > 8, pad to 16-row granularity so the
    # bf16 operand feeding the MXU is fully packed (bf16 packs 16 rows/vreg).
    return SUBLANE if b <= SUBLANE else _round_up(b, 2 * SUBLANE)


# ----------------------------- fused kernel ----------------------------------
def _make_fused_kernel(n_blocks, batch, batch_padded):
    """[Linear -> ReLU -> BN] x n_blocks -> Linear, all in one kernel.

    Ref layout (all VMEM, zero-padded to lane/sublane granularity):
      x_ref,
      [w_ref (Kp, Np) bf16, vec_ref (8, Np) f32: rows 0=bias,1=gamma,2=beta]
        * n_blocks,
      wf_ref (Kp, Doutp) bf16, vecf_ref (8, Doutp) f32: row 0 = bias,
      o_ref
    """
    needs_mask = (batch != batch_padded)
    inv_n = 1.0 / float(batch)

    def kernel(*refs):
        x_ref = refs[0]
        o_ref = refs[-1]
        p = 1

        x = x_ref[...]                                        # (Bp, Dp) f32

        if needs_mask:
            rows = lax.broadcasted_iota(jnp.int32, (batch_padded, 1), 0)
            row_mask = (rows < batch).astype(jnp.float32)     # (Bp, 1)

        for _ in range(n_blocks):
            w_ref, v_ref = refs[p], refs[p + 1]
            p += 2
            vec = v_ref[...]                                  # (8, Dp) f32
            bias, gamma, beta = vec[0:1, :], vec[1:2, :], vec[2:3, :]

            # Linear (bf16 MXU inputs, f32 accumulation) + bias, then ReLU.
            h = jnp.dot(x.astype(jnp.bfloat16), w_ref[...],
                        preferred_element_type=jnp.float32) + bias
            h = jnp.maximum(h, 0.0)

            # BatchNorm1d, one-pass batch stats (biased variance).
            # Mask only the sums; padded rows never touch the affine pass.
            hm = h * row_mask if needs_mask else h
            s1 = jnp.sum(hm, axis=0, keepdims=True)           # (1, Dp)
            s2 = jnp.sum(hm * hm, axis=0, keepdims=True)      # (1, Dp)
            mean = s1 * inv_n
            var = jnp.maximum(s2 * inv_n - mean * mean, 0.0)
            inv = lax.rsqrt(var + EPS)                        # EUP, ~free slot
            scale = gamma * inv
            shift = beta - mean * scale
            x = h * scale + shift                             # single affine pass

        wf_ref, vf_ref = refs[p], refs[p + 1]
        out = jnp.dot(x.astype(jnp.bfloat16), wf_ref[...],
                      preferred_element_type=jnp.float32) + vf_ref[0:1, :]
        o_ref[...] = out.astype(o_ref.dtype)

    return kernel


# ----------------------------- parameter preprocessing ------------------------
def prepare_params(block_params, final_w, final_b, input_size):
    """Pad / cast / pack all parameters ONCE (hoisted out of the per-call path).

    Returns a flat tuple:
      (w0_bf16, vec0, w1_bf16, vec1, ..., wf_bf16, vecf)
    where each vec is (8, Dp) f32 with rows 0=bias, 1=gamma, 2=beta
    (final vec uses row 0 = bias only).
    """
    padded = []
    d_in_p = _round_up(input_size, LANE)
    for (w, b, g, bb) in block_params:
        dh = w.shape[1]
        dhp = _round_up(dh, LANE)
        wp = _pad2(w, d_in_p, dhp).astype(jnp.bfloat16)       # (Kp, Np) bf16
        vec = jnp.zeros((SUBLANE, dhp), jnp.float32)
        vec = vec.at[0, :dh].set(b.reshape(-1))
        vec = vec.at[1, :dh].set(g.reshape(-1))
        vec = vec.at[2, :dh].set(bb.reshape(-1))
        padded += [wp, vec]
        d_in_p = dhp

    dout = final_w.shape[1]
    doutp = _round_up(dout, LANE)
    wfp = _pad2(final_w, d_in_p, doutp).astype(jnp.bfloat16)
    vecf = jnp.zeros((SUBLANE, doutp), jnp.float32).at[0, :dout].set(
        final_b.reshape(-1))
    padded += [wfp, vecf]
    return tuple(padded)


# ----------------------------- forward -----------------------------------------
def _fused_mlp_forward(x, padded_params, out_features):
    """x: (B, Din) f32.  padded_params: output of prepare_params.
    Returns (B, out_features) f32 (training-mode BN semantics)."""
    B, Din = x.shape
    Bp = _batch_pad(B)
    Dinp = _round_up(Din, LANE)
    n_blocks = (len(padded_params) - 2) // 2
    Doutp = padded_params[-1].shape[1]

    x_p = _pad2(x, Bp, Dinp)
    inputs = [x_p] + list(padded_params)

    # Advisory cost estimate (padded shapes; good enough for the scheduler).
    flops = 0
    transcendentals = 0
    for i in range(n_blocks + 1):
        wp = padded_params[2 * i]
        flops += 2 * Bp * wp.shape[0] * wp.shape[1]
        if i < n_blocks:
            transcendentals += wp.shape[1]                    # rsqrt per feature
    in_bytes = x_p.size * x_p.dtype.itemsize + sum(
        int(p.size) * p.dtype.itemsize for p in padded_params)
    out_bytes = Bp * Doutp * 4
    bytes_accessed = in_bytes + out_bytes

    # VMEM limit derived from the actual padded footprint (+~2x headroom),
    # capped at 64 MiB so the same kernel stays legal on v7x.
    vmem_limit = int(min(64 << 20, max(4 << 20, 2 * bytes_accessed + (1 << 20))))

    kernel = _make_fused_kernel(n_blocks, B, Bp)
    out_p = pl.pallas_call(
        kernel,
        out_shape=jax.ShapeDtypeStruct((Bp, Doutp), jnp.float32),
        in_specs=[pl.BlockSpec(memory_space=pltpu.MemorySpace.VMEM)] * len(inputs),
        out_specs=pl.BlockSpec(memory_space=pltpu.MemorySpace.VMEM),
        cost_estimate=pl.CostEstimate(
            flops=flops,
            transcendentals=transcendentals,
            bytes_accessed=bytes_accessed,
        ),
        compiler_params=pltpu.CompilerParams(vmem_limit_bytes=vmem_limit),
    )(*inputs)

    return out_p[:B, :out_features]


forward = jax.jit(_fused_mlp_forward, static_argnums=(2,))


# ----------------------------- params -----------------------------------------
def init_params(key, input_size, num_layers, hidden_size, output_size):
    """Deterministic synthetic init (PyTorch-style fan-in scaled uniform).
    Weights stored (in_features, out_features) so the kernel does x @ W + b,
    equivalent to PyTorch's x @ W.T with its (out, in) storage."""
    block_params = []
    d_in = input_size
    for _ in range(num_layers - 1):
        key, kw, kb = jax.random.split(key, 3)
        bound = 1.0 / jnp.sqrt(jnp.float32(d_in))
        w = jax.random.uniform(kw, (d_in, hidden_size), jnp.float32, -bound, bound)
        b = jax.random.uniform(kb, (1, hidden_size), jnp.float32, -bound, bound)
        gamma = jnp.ones((1, hidden_size), jnp.float32)   # BatchNorm1d weight
        beta = jnp.zeros((1, hidden_size), jnp.float32)   # BatchNorm1d bias
        block_params.append((w, b, gamma, beta))
        d_in = hidden_size
    key, kw, kb = jax.random.split(key, 3)
    bound = 1.0 / jnp.sqrt(jnp.float32(d_in))
    final_w = jax.random.uniform(kw, (d_in, output_size), jnp.float32, -bound, bound)
    final_b = jax.random.uniform(kb, (1, output_size), jnp.float32, -bound, bound)
    return block_params, final_w, final_b


def _reference_forward(x, block_params, final_w, final_b):
    """Pure-JAX f32 reference (PyTorch training-mode forward)."""
    h = x
    for (w, b, g, bb) in block_params:
        h = jnp.maximum(h @ w + b, 0.0)
        mean = jnp.mean(h, axis=0, keepdims=True)
        var = jnp.mean((h - mean) ** 2, axis=0, keepdims=True)   # biased
        h = g * (h - mean) * lax.rsqrt(var + EPS) + bb
    return h @ final_w + final_b


# ----------------------------- main --------------------------------------------
if __name__ == "__main__":
    # Small config consistent with the module's constructor signature.
    input_size, num_layers, hidden_size, output_size = 32, 3, 32, 16
    batch_size = 8

    key = jax.random.PRNGKey(0)
    key, kx = jax.random.split(key)
    x = jax.random.normal(kx, (batch_size, input_size), jnp.float32)

    block_params, final_w, final_b = init_params(
        key, input_size, num_layers, hidden_size, output_size)

    # One-time parameter preprocessing (padding / bf16 cast / vector packing).
    padded_params = jax.block_until_ready(
        prepare_params(block_params, final_w, final_b, input_size))

    out = forward(x, padded_params, output_size)
    out = jax.block_until_ready(out)

    assert out.shape == (batch_size, output_size)
    assert bool(jnp.all(jnp.isfinite(out)))

    # Numerical check vs. the f32 reference (bf16 matmul inputs -> loose tol).
    ref = _reference_forward(x, block_params, final_w, final_b)
    max_err = float(jnp.max(jnp.abs(out - ref)))
    assert max_err < 5e-2, f"max abs error vs reference too large: {max_err}"

    print("KERNEL_OK")
</pallas_src>

<mosaic_0001>
module attributes {stable_mosaic.version = 11 : i64} {
  func.func @kernel(%arg0: memref<8x128xf32, #tpu.memory_space<vmem>>, %arg1: memref<128x128xbf16, #tpu.memory_space<vmem>>, %arg2: memref<8x128xf32, #tpu.memory_space<vmem>>, %arg3: memref<128x128xbf16, #tpu.memory_space<vmem>>, %arg4: memref<8x128xf32, #tpu.memory_space<vmem>>, %arg5: memref<128x128xbf16, #tpu.memory_space<vmem>>, %arg6: memref<8x128xf32, #tpu.memory_space<vmem>>, %arg7: memref<8x128xf32, #tpu.memory_space<vmem>>) attributes {dimension_semantics = [], scalar_prefetch = 0 : i64, scratch_operands = 0 : i64, tpu.core_type = #tpu.core_type<tc>} {
    %c0 = arith.constant 0 : index
    %c0_0 = arith.constant 0 : index
    %0 = vector.load %arg0[%c0, %c0_0] : memref<8x128xf32, #tpu.memory_space<vmem>>, vector<8x128xf32>
    %c0_1 = arith.constant 0 : index
    %c0_2 = arith.constant 0 : index
    %1 = vector.load %arg2[%c0_1, %c0_2] : memref<8x128xf32, #tpu.memory_space<vmem>>, vector<8x128xf32>
    %2 = vector.extract_strided_slice %1 {offsets = [0, 0], sizes = [1, 128], strides = [1, 1]} : vector<8x128xf32> to vector<1x128xf32>
    %3 = vector.extract_strided_slice %1 {offsets = [1, 0], sizes = [1, 128], strides = [1, 1]} : vector<8x128xf32> to vector<1x128xf32>
    %4 = vector.extract_strided_slice %1 {offsets = [2, 0], sizes = [1, 128], strides = [1, 1]} : vector<8x128xf32> to vector<1x128xf32>
    %5 = arith.truncf %0 : vector<8x128xf32> to vector<8x128xbf16>
    %c0_3 = arith.constant 0 : index
    %c0_4 = arith.constant 0 : index
    %6 = vector.load %arg1[%c0_3, %c0_4] : memref<128x128xbf16, #tpu.memory_space<vmem>>, vector<128x128xbf16>
    %cst = arith.constant dense<0.000000e+00> : vector<8x128xf32>
    %7 = tpu.matmul %5, %6, %cst {dimension_numbers = #tpu.dot_dimension_numbers<[1], [0], [0], [1], [0, 0, 1, 1], [], []>} : vector<8x128xbf16>, vector<128x128xbf16>, vector<8x128xf32> -> vector<8x128xf32>
    %8 = vector.broadcast %2 : vector<1x128xf32> to vector<8x128xf32>
    %9 = arith.addf %7, %8 : vector<8x128xf32>
    %cst_5 = arith.constant 0.000000e+00 : f32
    %10 = vector.broadcast %cst_5 : f32 to vector<8x128xf32>
    %11 = arith.maximumf %9, %10 : vector<8x128xf32>
    %cst_6 = arith.constant dense<0.000000e+00> : vector<128xf32>
    %12 = vector.multi_reduction <add>, %11, %cst_6 [0] : vector<8x128xf32> to vector<128xf32>
    %13 = vector.shape_cast %12 : vector<128xf32> to vector<1x128xf32>
    %14 = arith.mulf %11, %11 : vector<8x128xf32>
    %cst_7 = arith.constant dense<0.000000e+00> : vector<128xf32>
    %15 = vector.multi_reduction <add>, %14, %cst_7 [0] : vector<8x128xf32> to vector<128xf32>
    %16 = vector.shape_cast %15 : vector<128xf32> to vector<1x128xf32>
    %cst_8 = arith.constant 1.250000e-01 : f32
    %17 = vector.broadcast %cst_8 : f32 to vector<1x128xf32>
    %18 = arith.mulf %13, %17 : vector<1x128xf32>
    %cst_9 = arith.constant 1.250000e-01 : f32
    %19 = vector.broadcast %cst_9 : f32 to vector<1x128xf32>
    %20 = arith.mulf %16, %19 : vector<1x128xf32>
    %21 = arith.mulf %18, %18 : vector<1x128xf32>
    %22 = arith.subf %20, %21 : vector<1x128xf32>
    %cst_10 = arith.constant 0.000000e+00 : f32
    %23 = vector.broadcast %cst_10 : f32 to vector<1x128xf32>
    %24 = arith.maximumf %22, %23 : vector<1x128xf32>
    %cst_11 = arith.constant 9.99999974E-6 : f32
    %25 = vector.broadcast %cst_11 : f32 to vector<1x128xf32>
    %26 = arith.addf %24, %25 : vector<1x128xf32>
    %27 = math.rsqrt %26 : vector<1x128xf32>
    %28 = arith.mulf %3, %27 : vector<1x128xf32>
    %29 = arith.mulf %18, %28 : vector<1x128xf32>
    %30 = arith.subf %4, %29 : vector<1x128xf32>
    %31 = vector.broadcast %28 : vector<1x128xf32> to vector<8x128xf32>
    %32 = arith.mulf %11, %31 : vector<8x128xf32>
    %33 = vector.broadcast %30 : vector<1x128xf32> to vector<8x128xf32>
    %34 = arith.addf %32, %33 : vector<8x128xf32>
    %c0_12 = arith.constant 0 : index
    %c0_13 = arith.constant 0 : index
    %35 = vector.load %arg4[%c0_12, %c0_13] : memref<8x128xf32, #tpu.memory_space<vmem>>, vector<8x128xf32>
    %36 = vector.extract_strided_slice %35 {offsets = [0, 0], sizes = [1, 128], strides = [1, 1]} : vector<8x128xf32> to vector<1x128xf32>
    %37 = vector.extract_strided_slice %35 {offsets = [1, 0], sizes = [1, 128], strides = [1, 1]} : vector<8x128xf32> to vector<1x128xf32>
    %38 = vector.extract_strided_slice %35 {offsets = [2, 0], sizes = [1, 128], strides = [1, 1]} : vector<8x128xf32> to vector<1x128xf32>
    %39 = arith.truncf %34 : vector<8x128xf32> to vector<8x128xbf16>
    %c0_14 = arith.constant 0 : index
    %c0_15 = arith.constant 0 : index
    %40 = vector.load %arg3[%c0_14, %c0_15] : memref<128x128xbf16, #tpu.memory_space<vmem>>, vector<128x128xbf16>
    %cst_16 = arith.constant dense<0.000000e+00> : vector<8x128xf32>
    %41 = tpu.matmul %39, %40, %cst_16 {dimension_numbers = #tpu.dot_dimension_numbers<[1], [0], [0], [1], [0, 0, 1, 1], [], []>} : vector<8x128xbf16>, vector<128x128xbf16>, vector<8x128xf32> -> vector<8x128xf32>
    %42 = vector.broadcast %36 : vector<1x128xf32> to vector<8x128xf32>
    %43 = arith.addf %41, %42 : vector<8x128xf32>
    %cst_17 = arith.constant 0.000000e+00 : f32
    %44 = vector.broadcast %cst_17 : f32 to vector<8x128xf32>
    %45 = arith.maximumf %43, %44 : vector<8x128xf32>
    %cst_18 = arith.constant dense<0.000000e+00> : vector<128xf32>
    %46 = vector.multi_reduction <add>, %45, %cst_18 [0] : vector<8x128xf32> to vector<128xf32>
    %47 = vector.shape_cast %46 : vector<128xf32> to vector<1x128xf32>
    %48 = arith.mulf %45, %45 : vector<8x128xf32>
    %cst_19 = arith.constant dense<0.000000e+00> : vector<128xf32>
    %49 = vector.multi_reduction <add>, %48, %cst_19 [0] : vector<8x128xf32> to vector<128xf32>
    %50 = vector.shape_cast %49 : vector<128xf32> to vector<1x128xf32>
    %cst_20 = arith.constant 1.250000e-01 : f32
    %51 = vector.broadcast %cst_20 : f32 to vector<1x128xf32>
    %52 = arith.mulf %47, %51 : vector<1x128xf32>
    %cst_21 = arith.constant 1.250000e-01 : f32
    %53 = vector.broadcast %cst_21 : f32 to vector<1x128xf32>
    %54 = arith.mulf %50, %53 : vector<1x128xf32>
    %55 = arith.mulf %52, %52 : vector<1x128xf32>
    %56 = arith.subf %54, %55 : vector<1x128xf32>
    %cst_22 = arith.constant 0.000000e+00 : f32
    %57 = vector.broadcast %cst_22 : f32 to vector<1x128xf32>
    %58 = arith.maximumf %56, %57 : vector<1x128xf32>
    %cst_23 = arith.constant 9.99999974E-6 : f32
    %59 = vector.broadcast %cst_23 : f32 to vector<1x128xf32>
    %60 = arith.addf %58, %59 : vector<1x128xf32>
    %61 = math.rsqrt %60 : vector<1x128xf32>
    %62 = arith.mulf %37, %61 : vector<1x128xf32>
    %63 = arith.mulf %52, %62 : vector<1x128xf32>
    %64 = arith.subf %38, %63 : vector<1x128xf32>
    %65 = vector.broadcast %62 : vector<1x128xf32> to vector<8x128xf32>
    %66 = arith.mulf %45, %65 : vector<8x128xf32>
    %67 = vector.broadcast %64 : vector<1x128xf32> to vector<8x128xf32>
    %68 = arith.addf %66, %67 : vector<8x128xf32>
    %69 = arith.truncf %68 : vector<8x128xf32> to vector<8x128xbf16>
    %c0_24 = arith.constant 0 : index
    %c0_25 = arith.constant 0 : index
    %70 = vector.load %arg5[%c0_24, %c0_25] : memref<128x128xbf16, #tpu.memory_space<vmem>>, vector<128x128xbf16>
    %cst_26 = arith.constant dense<0.000000e+00> : vector<8x128xf32>
    %71 = tpu.matmul %69, %70, %cst_26 {dimension_numbers = #tpu.dot_dimension_numbers<[1], [0], [0], [1], [0, 0, 1, 1], [], []>} : vector<8x128xbf16>, vector<128x128xbf16>, vector<8x128xf32> -> vector<8x128xf32>
    %c0_27 = arith.constant 0 : index
    %c0_28 = arith.constant 0 : index
    %72 = vector.load %arg6[%c0_27, %c0_28] : memref<8x128xf32, #tpu.memory_space<vmem>>, vector<1x128xf32>
    %73 = vector.broadcast %72 : vector<1x128xf32> to vector<8x128xf32>
    %74 = arith.addf %71, %73 : vector<8x128xf32>
    %c0_29 = arith.constant 0 : index
    %c0_30 = arith.constant 0 : index
    %75 = vector.load %arg7[%c0_29, %c0_30] : memref<8x128xf32, #tpu.memory_space<vmem>>, vector<8x128xf32>
    tpu.vector_store %arg7[%c0_29, %c0_30], %74 {strides = array<i32>} : memref<8x128xf32, #tpu.memory_space<vmem>>, vector<8x128xf32>,
    return
  }
}

</mosaic_0001>

<bundles_post_ra>
// kernel: _fused_mlp_forward.1
= control target key start
LH: loop header
LB: loop body
LE: loop exit
PB: predicated region body
PF: predicated region fallthrough
CT: control target
= control target key end

     0   :  { %12 = vsyncpa [#allocation3], 0  ;;  %s760_s0 = inlined_call_operand.vmem [shape: f32[8,128], index: 0, kind: input, shape index: {}]   ;;  %s761_s1 = inlined_call_operand.hbm [shape: bf16[128,128], index: 1, kind: input, shape index: {}]   ;;  %s762_s2 = inlined_call_operand.vmem [shape: f32[8,128], index: 2, kind: input, shape index: {}]   ;;  %s763_s3 = inlined_call_operand.hbm [shape: bf16[128,128], index: 3, kind: input, shape index: {}]   ;;  %s764_s4 = inlined_call_operand.vmem [shape: f32[8,128], index: 4, kind: input, shape index: {}]   ;;  %s765_s5 = inlined_call_operand.hbm [shape: bf16[128,128], index: 5, kind: input, shape index: {}]   ;;  %s766_s6 = inlined_call_operand.hbm [shape: f32[8,128], index: 6, kind: input, shape index: {}]   ;;  %s767_s7 = inlined_call_operand.hbm [shape: f32[8,128], index: 7, kind: output, shape index: {}]  }
   0x1   :  { %13 = vsyncpa [#allocation6], 0 }
   0x2   :  { %14 = vsyncpa [#allocation9], 0 }
   0x3   :  { %15 = vsyncpa [#allocation4], 0  ;;  %s37_s26 = sshll.u32 %s763_s3, 4  ;;  %s689_s27 = smov [#allocation5]   ;;  %s38_s26 = int_to_ptr.hbm [resolvable:$true] %s37_s26 }
   0x4   :  { %s39_s28 = sshll.u32 %s689_s27, 4  ;;  %s22_s8 = sshll.u32 %s761_s1, 4  ;;  %s40_s28 = int_to_ptr.vmem [resolvable:$true] %s39_s28  ;;  %s23_s8 = int_to_ptr.hbm [resolvable:$true] %s22_s8 }
   0x5   :  { %s690_s9 = smov 64   ;;  %s691_s10 = smov 4  }
   0x6   :  { %45 = dma.hbm_to_vmem [thread:$0]  %s38_s26, 1024, %s40_s28, [#allocation6], %s690_s9, %s690_s9, %s691_s10  }
   0x7   :  { %s692_s11 = smov [#allocation2]   ;;  %s52_s15 = sshll.u32 %s765_s5, 4  ;;  %s53_s15 = int_to_ptr.hbm [resolvable:$true] %s52_s15 }
   0x8   :  { %s24_s12 = sshll.u32 %s692_s11, 4  ;;  %s66_s17 = sshll.u32 %s766_s6, 4  ;;  %s25_s12 = int_to_ptr.vmem [resolvable:$true] %s24_s12  ;;  %s67_s17 = int_to_ptr.hbm [resolvable:$true] %s66_s17 }
   0x9   :  { %30 = dma.hbm_to_vmem [thread:$0]  %s23_s8, 1024, %s25_s12, [#allocation3], %s690_s9, %s690_s9, %s691_s10  }
   0xa   :  { %s693_s18 = smov [#allocation7]   ;;  %s694_s1 = smov [#allocation8]  }
   0xb   :  { %s54_s19 = sshll.u32 %s693_s18, 4  ;;  %s68_s20 = sshll.u32 %s694_s1, 4  ;;  %s55_s19 = int_to_ptr.vmem [resolvable:$true] %s54_s19  ;;  %s69_s20 = int_to_ptr.vmem [resolvable:$true] %s68_s20 }
   0xc   :  { %60 = dma.hbm_to_vmem [thread:$0]  %s53_s15, 1024, %s55_s19, [#allocation6], %s690_s9, %s690_s9, %s691_s10  }
   0xd   :  { %71 = dma.hbm_to_vmem [thread:$0]  %s67_s17, 128, %s69_s20, [#allocation9]  }
   0xe   :  { %681 = dma.done.wait [#allocation3], 1024  }
   0xf   :  { %682 = vsyncadd [#allocation3], 4294966272 }
  0x10   :  { %683 = dma.done.wait [#allocation6], 2048  }
  0x11   :  { %684 = vsyncadd [#allocation6], 4294965248 }
  0x12   :  { %685 = dma.done.wait [#allocation9], 128  }
  0x13   :  { %686 = vsyncadd [#allocation9], 4294967168  ;;  %v532_v0 = vld [vmem:[#allocation2 + $0x38] sm:$0xff]  ;;  %v531_v1 = vld [vmem:[#allocation2 + $0x30] sm:$0xff]  ;;  %s417_s26 = sshll.u32 %s767_s7, 4  ;;  %s418_s26 = int_to_ptr.hbm [resolvable:$true] %s417_s26 }
  0x14   :  { %156 = vmatpush.bf16.msra.mxu0 %v532_v0  ;;  %v530_v2 = vld [vmem:[#allocation2 + $0x28] sm:$0xff]  ;;  %v529_v3 = vld [vmem:[#allocation2 + $0x20] sm:$0xff]  ;;  %v528_v4 = vld [vmem:[#allocation2 + $0x18] sm:$0xff] }
  0x15   :  { %v527_v5 = vld [vmem:[#allocation2 + $0x10] sm:$0xff]  ;;  %v526_v6 = vld [vmem:[#allocation2 + $0x8] sm:$0xff]  ;;  %v525_v7 = vld [vmem:[#allocation2] sm:$0xff] }
  0x16   :  { %v88_v8 = vld [vmem:[%s760_s0] sm:$0xff]  ;;  %v540_v11 = vld [vmem:[#allocation5 + $0x38] sm:$0xff]  ;;  %v539_v13 = vld [vmem:[#allocation5 + $0x30] sm:$0xff] }
  0x17   :  { %v90_v9 = vpack.c.bf16 %v88_v8, %v88_v8  ;;  %v89_v10 = vld [vmem:[%s762_s2] sm:$0xff]  ;;  %276 = vmatpush.bf16.msra.mxu1 %v540_v11  ;;  %v538_v16 = vld [vmem:[#allocation5 + $0x28] sm:$0xff]  ;;  %v536_v26 = vld [vmem:[#allocation5 + $0x18] sm:$0xff] }
  0x18   :  { %157 = vmatpush.bf16.msra.mxu0 %v531_v1  ;;  %v107_v12 = vperm.slane %v89_v10, 0  ;;  %v537_v20 = vld [vmem:[#allocation5 + $0x20] sm:$0xff]  ;;  %v535_v31 = vld [vmem:[#allocation5 + $0x10] sm:$0xff]  ;;  %v534_v34 = vld [vmem:[#allocation5 + $0x8] sm:$0xff] }
  0x19   :  { %v533_v39 = vld [vmem:[#allocation5] sm:$0xff]  ;;  %v548_v60 = vld [vmem:[#allocation7 + $0x38] sm:$0xff]  ;;  %v547_v62 = vld [vmem:[#allocation7 + $0x30] sm:$0xff] }
  0x1a   :  { %v209_v59 = vld [vmem:[%s764_s4] sm:$0xff]  ;;  %396 = vmatpush.bf16.msra.mxu2 %v548_v60  ;;  %v546_v1 = vld [vmem:[#allocation7 + $0x28] sm:$0xff]  ;;  %v544_v11 = vld [vmem:[#allocation7 + $0x18] sm:$0xff]  ;;  %s695_s4 = smov [#allocation10]  }
  0x1b   :  { %277 = vmatpush.bf16.msra.mxu1 %v539_v13  ;;  %v227_v61 = vperm.slane %v209_v59, 0  ;;  %s415_s23 = sshll.u32 %s695_s4, 4  ;;  %s416_s23 = int_to_ptr.vmem [resolvable:$true] %s415_s23 }
  0x1c   :  { %158 = vmatpush.bf16.msra.mxu0 %v530_v2 }
  0x1e   :  { %397 = vmatpush.bf16.msra.mxu2 %v547_v62 }
  0x1f   :  { %278 = vmatpush.bf16.msra.mxu1 %v538_v16  ;;  %v543_v16 = vld [vmem:[#allocation7 + $0x10] sm:$0xff] }
  0x20   :  { %159 = vmatpush.bf16.msra.mxu0 %v529_v3 }
  0x22   :  { %398 = vmatpush.bf16.msra.mxu2 %v546_v1 }
  0x23   :  { %279 = vmatpush.bf16.msra.mxu1 %v537_v20 }
  0x24   :  { %160 = vmatpush.bf16.msra.mxu0 %v528_v4 }
  0x27   :  { %280 = vmatpush.bf16.msra.mxu1 %v536_v26 }
  0x28   :  { %161 = vmatpush.bf16.msra.mxu0 %v527_v5  ;;  %v545_v5 = vld [vmem:[#allocation7 + $0x20] sm:$0xff] }
  0x29   :  { %399 = vmatpush.bf16.msra.mxu2 %v545_v5 }
  0x2b   :  { %281 = vmatpush.bf16.msra.mxu1 %v535_v31 }
  0x2c   :  { %162 = vmatpush.bf16.msra.mxu0 %v526_v6 }
  0x2d   :  { %400 = vmatpush.bf16.msra.mxu2 %v544_v11 }
  0x2f   :  { %282 = vmatpush.bf16.msra.mxu1 %v534_v34 }
  0x30   :  { %163 = vmatpush.bf16.msra.mxu0 %v525_v7 }
  0x31   :  { %401 = vmatpush.bf16.msra.mxu2 %v543_v16 }
  0x33   :  { %164 = vmatmul.bf16.vlgmr.msra.gmra.mxu0 %v90_v9  ;;  %283 = vmatpush.bf16.msra.mxu1 %v533_v39 }
  0xb0   :  { %v165_v14 = vpop.f32.mrf.mxu0 }
  0xb1   :  { %v166_v15 = vadd.f32 %v165_v14, %v107_v12 }
  0xb3   :  { %v169_v17 = vmax.f32 %v166_v15, 0.0 }
  0xb5   :  { %v170_v18 = vrot.slane %v169_v17, 4  ;;  %v176_v19 = vmul.f32 %v169_v17, %v169_v17 }
  0xb7   :  { %v171_v21 = vadd.f32 %v170_v18, %v169_v17  ;;  %v177_v22 = vrot.slane %v176_v19, 4 }
  0xb8   :  { %v167_v23 = vpop.f32.mrf.mxu0 }
  0xb9   :  { %v172_v24 = vrot.slane %v171_v21, 2  ;;  %v178_v25 = vadd.f32 %v177_v22, %v176_v19  ;;  %v542_v19 = vld [vmem:[#allocation7 + $0x8] sm:$0xff] }
  0xba   :  { %402 = vmatpush.bf16.msra.mxu2 %v542_v19 }
  0xbb   :  { %v173_v27 = vadd.f32 %v172_v24, %v171_v21  ;;  %v179_v28 = vrot.slane %v178_v25, 2  ;;  %v541_v24 = vld [vmem:[#allocation7] sm:$0xff] }
  0xbd   :  { %v174_v29 = vrot.slane %v173_v27, 1  ;;  %v180_v30 = vadd.f32 %v179_v28, %v178_v25 }
  0xbe   :  { %403 = vmatpush.bf16.msra.mxu2 %v541_v24 }
  0xbf   :  { %v175_v32 = vadd.f32 %v174_v29, %v173_v27  ;;  %v181_v33 = vrot.slane %v180_v30, 1 }
  0xc1   :  { %v182_v35 = vadd.f32 %v181_v33, %v180_v30  ;;  %v183_v36 = vmul.f32 0.125, %v175_v32 }
  0xc3   :  { %v184_v37 = vmul.f32 0.125, %v182_v35  ;;  %v185_v38 = vmul.f32 %v183_v36, %v183_v36 }
  0xc5   :  { %v186_v40 = vsub.f32 %v184_v37, %v185_v38 }
  0xc7   :  { %v187_v41 = vmax.f32 %v186_v40, 0.0 }
  0xc9   :  { %v188_v42 = vadd.f32 1e-05, %v187_v41 }
  0xcb   :  { %557 = vrsqrt.f32 %v188_v42  ;;  %vm195_vm1 = vweird.f32 %v188_v42 }
  0xd1   :  { %v558_v43 = vpop.eup %557 }
  0xd2   :  { %v190_v44 = vmul.f32 %v558_v43, %v188_v42  ;;  %vm196_vm0 = vweird.f32 %v558_v43 }
  0xd3   :  { %vm197_vm2 = vmor %vm195_vm1, %vm196_vm0 }
  0xd4   :  { %v191_v45 = vmul.f32 %v558_v43, %v190_v44  ;;  %v556_v44 = vld [vmem:[#allocation8] ss:$0 sm:$0xff] }
  0xd6   :  { %v192_v46 = vmul.f32 0.5, %v191_v45 }
  0xd8   :  { %v193_v47 = vsub.f32 1.5, %v192_v46 }
  0xda   :  { %v194_v48 = vmul.f32 %v558_v43, %v193_v47 }
  0xdc   :  { %v198_v49 = vsel %vm197_vm2, %v558_v43, %v194_v48 }
  0xdd   :  { %v199_v50 = vmul.f32 %v198_v49, %v89_v10 }
  0xdf   :  { %v200_v51 = vmul.f32 %v199_v50, %v183_v36  ;;  %v205_v53 = vperm.slane %v199_v50, 1 }
  0xe1   :  { %v202_v52 = vrot.slane %v200_v51, 7  ;;  %v206_v55 = vmul.f32 %v205_v53, %v169_v17 }
  0xe3   :  { %v204_v54 = vsub.f32 %v89_v10, %v202_v52 }
  0xe5   :  { %v207_v56 = vperm.slane %v204_v54, 2 }
  0xe7   :  { %v208_v57 = vadd.f32 %v207_v56, %v206_v55 }
  0xe9   :  { %v210_v58 = vpack.c.bf16 %v208_v57, %v208_v57 }
  0xeb   :  { %284 = vmatmul.bf16.vlgmr.msra.gmra.mxu1 %v210_v58 }
 0x168   :  { %v285_v63 = vpop.f32.mrf.mxu1 }
 0x169   :  { %v286_v0 = vadd.f32 %v285_v63, %v227_v61 }
 0x16b   :  { %v289_v2 = vmax.f32 %v286_v0, 0.0 }
 0x16d   :  { %v290_v3 = vrot.slane %v289_v2, 4  ;;  %v296_v4 = vmul.f32 %v289_v2, %v289_v2 }
 0x16f   :  { %v291_v6 = vadd.f32 %v290_v3, %v289_v2  ;;  %v297_v7 = vrot.slane %v296_v4, 4 }
 0x170   :  { %v287_v8 = vpop.f32.mrf.mxu1 }
 0x171   :  { %v292_v9 = vrot.slane %v291_v6, 2  ;;  %v298_v10 = vadd.f32 %v297_v7, %v296_v4 }
 0x173   :  { %v293_v12 = vadd.f32 %v292_v9, %v291_v6  ;;  %v299_v13 = vrot.slane %v298_v10, 2 }
 0x175   :  { %v294_v14 = vrot.slane %v293_v12, 1  ;;  %v300_v15 = vadd.f32 %v299_v13, %v298_v10 }
 0x177   :  { %v295_v17 = vadd.f32 %v294_v14, %v293_v12  ;;  %v301_v18 = vrot.slane %v300_v15, 1 }
 0x179   :  { %v302_v20 = vadd.f32 %v301_v18, %v300_v15  ;;  %v303_v21 = vmul.f32 0.125, %v295_v17 }
 0x17b   :  { %v304_v22 = vmul.f32 0.125, %v302_v20  ;;  %v305_v23 = vmul.f32 %v303_v21, %v303_v21 }
 0x17d   :  { %v306_v25 = vsub.f32 %v304_v22, %v305_v23 }
 0x17f   :  { %v307_v26 = vmax.f32 %v306_v25, 0.0 }
 0x181   :  { %v308_v27 = vadd.f32 1e-05, %v307_v26 }
 0x183   :  { %559 = vrsqrt.f32 %v308_v27  ;;  %vm315_vm4 = vweird.f32 %v308_v27 }
 0x189   :  { %v560_v28 = vpop.eup %559 }
 0x18a   :  { %v310_v29 = vmul.f32 %v560_v28, %v308_v27  ;;  %vm316_vm3 = vweird.f32 %v560_v28 }
 0x18b   :  { %vm317_vm5 = vmor %vm315_vm4, %vm316_vm3 }
 0x18c   :  { %v311_v30 = vmul.f32 %v560_v28, %v310_v29 }
 0x18e   :  { %v312_v31 = vmul.f32 0.5, %v311_v30 }
 0x190   :  { %v313_v32 = vsub.f32 1.5, %v312_v31 }
 0x192   :  { %v314_v33 = vmul.f32 %v560_v28, %v313_v32 }
 0x194   :  { %v318_v34 = vsel %vm317_vm5, %v560_v28, %v314_v33 }
 0x195   :  { %v319_v35 = vmul.f32 %v318_v34, %v209_v59 }
 0x197   :  { %v320_v36 = vmul.f32 %v319_v35, %v303_v21  ;;  %v325_v38 = vperm.slane %v319_v35, 1 }
 0x199   :  { %v322_v37 = vrot.slane %v320_v36, 7  ;;  %v326_v40 = vmul.f32 %v325_v38, %v289_v2 }
 0x19b   :  { %v324_v39 = vsub.f32 %v209_v59, %v322_v37 }
 0x19d   :  { %v327_v41 = vperm.slane %v324_v39, 2 }
 0x19f   :  { %v328_v42 = vadd.f32 %v327_v41, %v326_v40 }
 0x1a1   :  { %v329_v43 = vpack.c.bf16 %v328_v42, %v328_v42 }
 0x1a3   :  { %404 = vmatmul.bf16.vlgmr.msra.gmra.mxu2 %v329_v43 }
 0x226   :  { %v405_v45 = vpop.f32.mrf.mxu2 }
 0x227   :  { %v406_v46 = vadd.f32 %v556_v44, %v405_v45 }
 0x229   :  { %409 = vst [vmem:[#allocation10] sm:$0xff] %v406_v46 }
 0x22a   :  { %420 = dma.vmem_to_hbm [thread:$0]  %s416_s23, 128, %s418_s26, [#allocation4]  }
 0x22e   :  { %v407_v47 = vpop.f32.mrf.mxu2 }
 0x22f   :  { %687 = dma.done.wait [#allocation4], 128  }
 0x230   :  { %688 = vsyncadd [#allocation4], 4294967168 }
 0x231   :  { %425 = vsyncpa [#allocation3], 1 }
 0x232   :  { %426 = vsyncpa [#allocation6], 1 }
 0x233   :  { %427 = vsyncpa [#allocation9], 1 }
 0x234   :  { %428 = vsyncpa [#allocation4], 1 }

</bundles_post_ra>
